<compile_context>
chip_gen: v5e
topology: v5e:2x2
jax: 0.10.0
libtpu: 0.0.40
codegen_flags: <defaults>
</compile_context>

<pallas_src>
import jax
import jax.numpy as jnp
from jax.experimental import pallas as pl
from jax.experimental.pallas import tpu as pltpu


def _round_up(x, m):
    return ((x + m - 1) // m) * m


def _vmem_budget_and_limit():
    """Generation-aware VMEM plan (v5e/v6e: 128 MiB physical, v7x: 64 MiB)."""
    phys = 64 * 1024 * 1024
    try:
        info = pltpu.get_tpu_info()
        phys = int(getattr(info, "vmem_capacity_bytes", phys) or phys)
    except Exception:
        pass
    if phys >= 96 * 1024 * 1024:                 # v5e / v6e
        return 48 * 1024 * 1024, 64 * 1024 * 1024
    return 20 * 1024 * 1024, 32 * 1024 * 1024    # v7x-class: stay well under 64 MiB


# ---------------------------------------------------------------------------
# Fused path: tables resident in VMEM, gather + normalize + distance in-kernel.
# Layout is transposed (D, TB): batch on the dense 128-lane axis.
# ---------------------------------------------------------------------------

def _transe_fused_kernel(ent_t_ref, rel_t_ref, e1_ref, rl_ref, e2_ref, out_ref):
    ent_t = ent_t_ref[...]                     # (D, E) f32, resident across tiles
    rel_t = rel_t_ref[...]                     # (D, R) f32, resident across tiles
    e1 = e1_ref[...]                           # (1, TB) int32
    rl = rl_ref[...]
    e2 = e2_ref[...]
    tb = e1.shape[1]

    def split_hi_lo(t):
        # Exact bf16 + residual split: one-hot @ hi and one-hot @ lo are both
        # selection-exact even if the MXU runs reduced-precision f32 passes.
        hi = t.astype(jnp.bfloat16).astype(jnp.float32)
        return hi, t - hi

    ent_hi, ent_lo = split_hi_lo(ent_t)
    rel_hi, rel_lo = split_hi_lo(rel_t)

    def gather_cols(hi, lo, idx_row):
        # One-hot gather on the otherwise-idle MXU: (D, N) @ (N, TB) -> (D, TB).
        n = hi.shape[1]
        onehot = (jax.lax.broadcasted_iota(jnp.int32, (n, tb), 0)
                  == idx_row).astype(jnp.float32)
        g = jnp.dot(hi, onehot, preferred_element_type=jnp.float32)
        return g + jnp.dot(lo, onehot, preferred_element_type=jnp.float32)

    h_t = gather_cols(ent_hi, ent_lo, e1)      # (D, TB)
    r_t = gather_cols(rel_hi, rel_lo, rl)
    t_t = gather_cols(ent_hi, ent_lo, e2)

    # torch.nn.functional.normalize clamps the norm at eps=1e-12; clamping the
    # squared norm at eps^2 and using rsqrt (EUP slot) is equivalent here.
    eps_sq = jnp.float32(1e-24)
    h_ssq = jnp.sum(h_t * h_t, axis=0, keepdims=True)      # (1, TB)
    t_ssq = jnp.sum(t_t * t_t, axis=0, keepdims=True)
    h_unit = h_t * jax.lax.rsqrt(jnp.maximum(h_ssq, eps_sq))
    t_unit = t_t * jax.lax.rsqrt(jnp.maximum(t_ssq, eps_sq))

    d = h_unit + r_t - t_unit
    # Lane-dense (1, TB) output row: unmasked stores, dense writeback DMA.
    out_ref[...] = jnp.sqrt(jnp.sum(d * d, axis=0, keepdims=True))


def _pick_lane_tile(B, D, num_ent, num_rel, budget_bytes):
    """Largest lane (batch) tile whose live intermediates fit the VMEM budget."""
    itemsize = 4
    d8 = _round_up(max(D, 1), 8)                    # sublane padding of (D, TB) slabs
    n8 = _round_up(max(num_ent, num_rel, 1), 8)     # sublane padding of one-hot slabs
    # per-lane f32 footprint: ~6 (D, TB) intermediates, ~2 (N, TB) one-hots,
    # plus the sublane-padded (8, TB) idx/out IO blocks, double-buffered.
    per_lane = (6 * d8 + 2 * n8 + 8 * 8) * itemsize
    cap = max(128, min(8192, ((budget_bytes // 2) // per_lane) // 128 * 128))
    b_lanes = _round_up(B, 128)
    tb = min(cap, b_lanes)
    # Keep >= 2 grid steps when the batch allows: lets v7x's two TensorCores
    # split the work; costs one extra ~0.35us step on v5e/v6e (negligible).
    if tb >= b_lanes and b_lanes >= 256:
        tb = _round_up(pl.cdiv(b_lanes, 2), 128)
    n_tiles = pl.cdiv(b_lanes, tb)
    return tb, n_tiles


def transe_distance_fused(emb_ent_t, emb_rel_t, e1_idx, rel_idx, e2_idx):
    """emb_ent_t: (D, E), emb_rel_t: (D, R) f32; idx arrays: (B,) -> (B,) f32."""
    D, E = emb_ent_t.shape
    _, R = emb_rel_t.shape
    B = int(e1_idx.shape[0])
    budget, vmem_limit = _vmem_budget_and_limit()
    tb, n_tiles = _pick_lane_tile(B, D, E, R, budget)
    b_pad = tb * n_tiles

    def prep_idx(idx):
        idx = jnp.asarray(idx, jnp.int32).reshape(-1)
        return jnp.pad(idx, (0, b_pad - B)).reshape(1, b_pad)

    e1p, rlp, e2p = prep_idx(e1_idx), prep_idx(rel_idx), prep_idx(e2_idx)

    out = pl.pallas_call(
        _transe_fused_kernel,
        out_shape=jax.ShapeDtypeStruct((1, b_pad), jnp.float32),
        grid=(n_tiles,),
        in_specs=[
            pl.BlockSpec((D, E), lambda i: (0, 0)),   # entity table: stays resident
            pl.BlockSpec((D, R), lambda i: (0, 0)),   # relation table: stays resident
            pl.BlockSpec((1, tb), lambda i: (0, i)),  # head indices (lane-major)
            pl.BlockSpec((1, tb), lambda i: (0, i)),  # relation indices
            pl.BlockSpec((1, tb), lambda i: (0, i)),  # tail indices
        ],
        out_specs=pl.BlockSpec((1, tb), lambda i: (0, i)),
        compiler_params=pltpu.CompilerParams(
            dimension_semantics=("parallel",),
            vmem_limit_bytes=vmem_limit,
        ),
    )(emb_ent_t, emb_rel_t, e1p, rlp, e2p)
    return out[0, :B]


# ---------------------------------------------------------------------------
# Fallback path: tables too large for VMEM.  XLA gather (+allow_input_fusion)
# feeding a batch-row-tiled streaming kernel.
# ---------------------------------------------------------------------------

def _transe_rows_kernel(head_ref, rel_ref, tail_ref, out_ref):
    h = head_ref[...]
    r = rel_ref[...]
    t = tail_ref[...]
    eps_sq = jnp.float32(1e-24)
    h_ssq = jnp.sum(h * h, axis=1, keepdims=True)
    t_ssq = jnp.sum(t * t, axis=1, keepdims=True)
    h_unit = h * jax.lax.rsqrt(jnp.maximum(h_ssq, eps_sq))
    t_unit = t * jax.lax.rsqrt(jnp.maximum(t_ssq, eps_sq))
    d = h_unit + r - t_unit
    # TODO(synk): lane-dense (1, TB) output relayout here too (as in fused path).
    out_ref[...] = jnp.sqrt(jnp.sum(d * d, axis=1, keepdims=True))


def _pick_batch_tile(B, D, budget_bytes):
    """Largest row tile fitting a double-buffered, lane-padding-aware budget."""
    itemsize = 4
    d_lanes = _round_up(D, 128)                     # VMEM pads lanes to 128
    # 3 double-buffered (TB, D) inputs + 1 double-buffered (TB, 1->128) output.
    bytes_per_row = (3 * 2 * d_lanes + 2 * 128) * itemsize
    cap = max(8, min(8192, (budget_bytes // bytes_per_row) // 8 * 8))
    b8 = _round_up(B, 8)
    if cap >= b8 and b8 >= 16:
        cap = max(8, _round_up(pl.cdiv(b8, 2), 8))  # >=2 tiles for v7x megacore
    n_tiles = pl.cdiv(b8, cap)
    tb = _round_up(pl.cdiv(b8, n_tiles), 8)
    n_tiles = pl.cdiv(b8, tb)
    return tb, n_tiles * tb


def transe_distance_rows(emb_head, emb_rel, emb_tail):
    """emb_head/emb_rel/emb_tail: (B, D) float32 -> (B,) float32 distance."""
    emb_head = jnp.asarray(emb_head, jnp.float32)
    emb_rel = jnp.asarray(emb_rel, jnp.float32)
    emb_tail = jnp.asarray(emb_tail, jnp.float32)

    B, D = emb_head.shape
    budget, vmem_limit = _vmem_budget_and_limit()
    tb, b_pad = _pick_batch_tile(B, D, budget)

    if b_pad != B:
        pad = b_pad - B
        emb_head = jnp.pad(emb_head, ((0, pad), (0, 0)))
        emb_rel = jnp.pad(emb_rel, ((0, pad), (0, 0)))
        emb_tail = jnp.pad(emb_tail, ((0, pad), (0, 0)))

    out = pl.pallas_call(
        _transe_rows_kernel,
        out_shape=jax.ShapeDtypeStruct((b_pad, 1), jnp.float32),
        grid=(b_pad // tb,),
        in_specs=[
            pl.BlockSpec((tb, D), lambda i: (i, 0)),
            pl.BlockSpec((tb, D), lambda i: (i, 0)),
            pl.BlockSpec((tb, D), lambda i: (i, 0)),
        ],
        out_specs=pl.BlockSpec((tb, 1), lambda i: (i, 0)),
        compiler_params=pltpu.CompilerParams(
            dimension_semantics=("parallel",),
            vmem_limit_bytes=vmem_limit,
            # Let XLA fuse the producing gathers into the kernel's input DMAs so
            # the 3x(B, D) intermediates are not materialized in HBM.
            allow_input_fusion=[True, True, True],
        ),
    )(emb_head, emb_rel, emb_tail)
    return out[:B, 0]


# ---------------------------------------------------------------------------
# Model
# ---------------------------------------------------------------------------

def _tables_fit_fused(num_entities, num_relations, D):
    d8 = _round_up(D, 8)
    table_bytes = 4 * d8 * (_round_up(num_entities, 128) + _round_up(num_relations, 128))
    # Keep resident tables (counted double-buffered) small, and the one-hot
    # gather matmul cheap relative to the HBM traffic it removes.
    return max(num_entities, num_relations) <= 1024 and 2 * table_bytes <= (8 << 20)


class TransE:
    """JAX/Pallas port of the PyTorch TransE module (forward pass)."""

    def __init__(self, embedding_dim, num_entities, num_relations, key):
        self.name = "TransE"
        self.embedding_dim = embedding_dim
        self.num_entities = num_entities
        self.num_relations = num_relations
        bound = 6.0 / float(embedding_dim) ** 0.5
        k_ent, k_rel = jax.random.split(key)
        # TODO(synk): optional bf16 table storage (halves HBM reads for the
        # unfused path); kept f32 here to match the PyTorch reference numerics.
        self.emb_ent = jax.random.uniform(
            k_ent, (num_entities, embedding_dim),
            minval=-bound, maxval=bound, dtype=jnp.float32)
        self.emb_rel = jax.random.uniform(
            k_rel, (num_relations, embedding_dim),
            minval=-bound, maxval=bound, dtype=jnp.float32)
        # Pre-transposed copies for the fused kernel (lane axis = table row id).
        self.emb_ent_t = jnp.asarray(self.emb_ent.T)
        self.emb_rel_t = jnp.asarray(self.emb_rel.T)
        self._fused = _tables_fit_fused(num_entities, num_relations, embedding_dim)

    def __call__(self, e1_idx, rel_idx, e2_idx):
        if self._fused:
            return transe_distance_fused(
                self.emb_ent_t, self.emb_rel_t, e1_idx, rel_idx, e2_idx)
        # Tables too large to keep resident in VMEM: XLA gather + streaming kernel.
        emb_head = jnp.take(self.emb_ent, e1_idx, axis=0)
        emb_rel = jnp.take(self.emb_rel, rel_idx, axis=0)
        emb_tail = jnp.take(self.emb_ent, e2_idx, axis=0)
        return transe_distance_rows(emb_head, emb_rel, emb_tail)


def _reference(model, e1_idx, rel_idx, e2_idx):
    h = jnp.take(model.emb_ent, e1_idx, axis=0)
    r = jnp.take(model.emb_rel, rel_idx, axis=0)
    t = jnp.take(model.emb_ent, e2_idx, axis=0)
    hn = h / jnp.maximum(jnp.linalg.norm(h, axis=1, keepdims=True), 1e-12)
    tn = t / jnp.maximum(jnp.linalg.norm(t, axis=1, keepdims=True), 1e-12)
    return jnp.linalg.norm(hn + r - tn, axis=1)


if __name__ == "__main__":
    key = jax.random.PRNGKey(0)
    k_model, k1, k2, k3 = jax.random.split(key, 4)

    embedding_dim = 32
    num_entities = 50
    num_relations = 10
    batch = 8

    model = TransE(embedding_dim, num_entities, num_relations, k_model)

    e1_idx = jax.random.randint(k1, (batch,), 0, num_entities)
    rel_idx = jax.random.randint(k2, (batch,), 0, num_relations)
    e2_idx = jax.random.randint(k3, (batch,), 0, num_entities)

    dist = model(e1_idx, rel_idx, e2_idx)
    jax.block_until_ready(dist)

    ref = _reference(model, e1_idx, rel_idx, e2_idx)
    assert dist.shape == (batch,)
    assert jnp.allclose(dist, ref, rtol=1e-4, atol=1e-4), (
        "max abs err = %s" % jnp.max(jnp.abs(dist - ref)))

    print("KERNEL_OK")
</pallas_src>

<mosaic_0001>
module attributes {stable_mosaic.version = 11 : i64} {
  func.func @_transe_fused_kernel(%arg0: i32, %arg1: memref<32x50xf32, #tpu.memory_space<vmem>>, %arg2: memref<32x10xf32, #tpu.memory_space<vmem>>, %arg3: memref<1x128xi32, #tpu.memory_space<vmem>>, %arg4: memref<1x128xi32, #tpu.memory_space<vmem>>, %arg5: memref<1x128xi32, #tpu.memory_space<vmem>>, %arg6: memref<1x128xf32, #tpu.memory_space<vmem>>) attributes {dimension_semantics = [#tpu.dimension_semantics<parallel>], iteration_bounds = array<i64: 1>, scalar_prefetch = 0 : i64, scratch_operands = 0 : i64, tpu.core_type = #tpu.core_type<tc>, window_params = [{pipeline_mode = #tpu.pipeline_mode<synchronous>, transform_indices = @transform_0, window_bounds = array<i64: 32, 50>}, {pipeline_mode = #tpu.pipeline_mode<synchronous>, transform_indices = @transform_1, window_bounds = array<i64: 32, 10>}, {transform_indices = @transform_2, window_bounds = array<i64: 1, 128>}, {transform_indices = @transform_3, window_bounds = array<i64: 1, 128>}, {transform_indices = @transform_4, window_bounds = array<i64: 1, 128>}, {transform_indices = @transform_5, window_bounds = array<i64: 1, 128>}]} {
    %c0 = arith.constant 0 : index
    %c0_0 = arith.constant 0 : index
    %0 = vector.load %arg1[%c0, %c0_0] : memref<32x50xf32, #tpu.memory_space<vmem>>, vector<32x50xf32>
    %c0_1 = arith.constant 0 : index
    %c0_2 = arith.constant 0 : index
    %1 = vector.load %arg2[%c0_1, %c0_2] : memref<32x10xf32, #tpu.memory_space<vmem>>, vector<32x10xf32>
    %c0_3 = arith.constant 0 : index
    %c0_4 = arith.constant 0 : index
    %2 = vector.load %arg3[%c0_3, %c0_4] : memref<1x128xi32, #tpu.memory_space<vmem>>, vector<1x128xi32>
    %c0_5 = arith.constant 0 : index
    %c0_6 = arith.constant 0 : index
    %3 = vector.load %arg4[%c0_5, %c0_6] : memref<1x128xi32, #tpu.memory_space<vmem>>, vector<1x128xi32>
    %c0_7 = arith.constant 0 : index
    %c0_8 = arith.constant 0 : index
    %4 = vector.load %arg5[%c0_7, %c0_8] : memref<1x128xi32, #tpu.memory_space<vmem>>, vector<1x128xi32>
    %5 = arith.truncf %0 : vector<32x50xf32> to vector<32x50xbf16>
    %6 = arith.extf %5 : vector<32x50xbf16> to vector<32x50xf32>
    %7 = arith.subf %0, %6 : vector<32x50xf32>
    %8 = arith.truncf %1 : vector<32x10xf32> to vector<32x10xbf16>
    %9 = arith.extf %8 : vector<32x10xbf16> to vector<32x10xf32>
    %10 = arith.subf %1, %9 : vector<32x10xf32>
    %11 = tpu.iota {dimensions = array<i32: 0>} : vector<50x128xi32>
    %12 = vector.broadcast %2 : vector<1x128xi32> to vector<50x128xi32>
    %13 = arith.cmpi eq, %11, %12 : vector<50x128xi32>
    %14 = arith.extui %13 : vector<50x128xi1> to vector<50x128xi32>
    %15 = arith.sitofp %14 : vector<50x128xi32> to vector<50x128xf32>
    %cst = arith.constant dense<0.000000e+00> : vector<32x128xf32>
    %16 = tpu.matmul %6, %15, %cst {dimension_numbers = #tpu.dot_dimension_numbers<[1], [0], [0], [1], [0, 0, 1, 1], [], []>} : vector<32x50xf32>, vector<50x128xf32>, vector<32x128xf32> -> vector<32x128xf32>
    %cst_9 = arith.constant dense<0.000000e+00> : vector<32x128xf32>
    %17 = tpu.matmul %7, %15, %cst_9 {dimension_numbers = #tpu.dot_dimension_numbers<[1], [0], [0], [1], [0, 0, 1, 1], [], []>} : vector<32x50xf32>, vector<50x128xf32>, vector<32x128xf32> -> vector<32x128xf32>
    %18 = arith.addf %16, %17 : vector<32x128xf32>
    %19 = tpu.iota {dimensions = array<i32: 0>} : vector<10x128xi32>
    %20 = vector.broadcast %3 : vector<1x128xi32> to vector<10x128xi32>
    %21 = arith.cmpi eq, %19, %20 : vector<10x128xi32>
    %22 = arith.extui %21 : vector<10x128xi1> to vector<10x128xi32>
    %23 = arith.sitofp %22 : vector<10x128xi32> to vector<10x128xf32>
    %cst_10 = arith.constant dense<0.000000e+00> : vector<32x128xf32>
    %24 = tpu.matmul %9, %23, %cst_10 {dimension_numbers = #tpu.dot_dimension_numbers<[1], [0], [0], [1], [0, 0, 1, 1], [], []>} : vector<32x10xf32>, vector<10x128xf32>, vector<32x128xf32> -> vector<32x128xf32>
    %cst_11 = arith.constant dense<0.000000e+00> : vector<32x128xf32>
    %25 = tpu.matmul %10, %23, %cst_11 {dimension_numbers = #tpu.dot_dimension_numbers<[1], [0], [0], [1], [0, 0, 1, 1], [], []>} : vector<32x10xf32>, vector<10x128xf32>, vector<32x128xf32> -> vector<32x128xf32>
    %26 = arith.addf %24, %25 : vector<32x128xf32>
    %27 = tpu.iota {dimensions = array<i32: 0>} : vector<50x128xi32>
    %28 = vector.broadcast %4 : vector<1x128xi32> to vector<50x128xi32>
    %29 = arith.cmpi eq, %27, %28 : vector<50x128xi32>
    %30 = arith.extui %29 : vector<50x128xi1> to vector<50x128xi32>
    %31 = arith.sitofp %30 : vector<50x128xi32> to vector<50x128xf32>
    %cst_12 = arith.constant dense<0.000000e+00> : vector<32x128xf32>
    %32 = tpu.matmul %6, %31, %cst_12 {dimension_numbers = #tpu.dot_dimension_numbers<[1], [0], [0], [1], [0, 0, 1, 1], [], []>} : vector<32x50xf32>, vector<50x128xf32>, vector<32x128xf32> -> vector<32x128xf32>
    %cst_13 = arith.constant dense<0.000000e+00> : vector<32x128xf32>
    %33 = tpu.matmul %7, %31, %cst_13 {dimension_numbers = #tpu.dot_dimension_numbers<[1], [0], [0], [1], [0, 0, 1, 1], [], []>} : vector<32x50xf32>, vector<50x128xf32>, vector<32x128xf32> -> vector<32x128xf32>
    %34 = arith.addf %32, %33 : vector<32x128xf32>
    %35 = arith.mulf %18, %18 : vector<32x128xf32>
    %cst_14 = arith.constant dense<0.000000e+00> : vector<128xf32>
    %36 = vector.multi_reduction <add>, %35, %cst_14 [0] : vector<32x128xf32> to vector<128xf32>
    %37 = vector.shape_cast %36 : vector<128xf32> to vector<1x128xf32>
    %38 = arith.mulf %34, %34 : vector<32x128xf32>
    %cst_15 = arith.constant dense<0.000000e+00> : vector<128xf32>
    %39 = vector.multi_reduction <add>, %38, %cst_15 [0] : vector<32x128xf32> to vector<128xf32>
    %40 = vector.shape_cast %39 : vector<128xf32> to vector<1x128xf32>
    %cst_16 = arith.constant 1.000000e-24 : f32
    %41 = vector.broadcast %cst_16 : f32 to vector<1x128xf32>
    %42 = arith.maximumf %37, %41 : vector<1x128xf32>
    %43 = math.rsqrt %42 : vector<1x128xf32>
    %44 = vector.broadcast %43 : vector<1x128xf32> to vector<32x128xf32>
    %45 = arith.mulf %18, %44 : vector<32x128xf32>
    %cst_17 = arith.constant 1.000000e-24 : f32
    %46 = vector.broadcast %cst_17 : f32 to vector<1x128xf32>
    %47 = arith.maximumf %40, %46 : vector<1x128xf32>
    %48 = math.rsqrt %47 : vector<1x128xf32>
    %49 = vector.broadcast %48 : vector<1x128xf32> to vector<32x128xf32>
    %50 = arith.mulf %34, %49 : vector<32x128xf32>
    %51 = arith.addf %45, %26 : vector<32x128xf32>
    %52 = arith.subf %51, %50 : vector<32x128xf32>
    %53 = arith.mulf %52, %52 : vector<32x128xf32>
    %cst_18 = arith.constant dense<0.000000e+00> : vector<128xf32>
    %54 = vector.multi_reduction <add>, %53, %cst_18 [0] : vector<32x128xf32> to vector<128xf32>
    %55 = vector.shape_cast %54 : vector<128xf32> to vector<1x128xf32>
    %56 = math.sqrt %55 : vector<1x128xf32>
    %c0_19 = arith.constant 0 : index
    %c0_20 = arith.constant 0 : index
    %57 = vector.load %arg6[%c0_19, %c0_20] : memref<1x128xf32, #tpu.memory_space<vmem>>, vector<1x128xf32>
    tpu.vector_store %arg6[%c0_19, %c0_20], %56 {strides = array<i32>} : memref<1x128xf32, #tpu.memory_space<vmem>>, vector<1x128xf32>,
    return
  }
  func.func @transform_0(%arg0: i32) -> (i32, i32) {
    %c0_i32 = arith.constant 0 : i32
    %c0_i32_0 = arith.constant 0 : i32
    %c0_i32_1 = arith.constant 0 : i32
    return %c0_i32, %c0_i32_0 : i32, i32
  }
  func.func @transform_1(%arg0: i32) -> (i32, i32) {
    %c0_i32 = arith.constant 0 : i32
    %c0_i32_0 = arith.constant 0 : i32
    %c0_i32_1 = arith.constant 0 : i32
    return %c0_i32, %c0_i32_0 : i32, i32
  }
  func.func @transform_2(%arg0: i32) -> (i32, i32) {
    %c0_i32 = arith.constant 0 : i32
    %c0_i32_0 = arith.constant 0 : i32
    return %c0_i32, %arg0 : i32, i32
  }
  func.func @transform_3(%arg0: i32) -> (i32, i32) {
    %c0_i32 = arith.constant 0 : i32
    %c0_i32_0 = arith.constant 0 : i32
    return %c0_i32, %arg0 : i32, i32
  }
  func.func @transform_4(%arg0: i32) -> (i32, i32) {
    %c0_i32 = arith.constant 0 : i32
    %c0_i32_0 = arith.constant 0 : i32
    return %c0_i32, %arg0 : i32, i32
  }
  func.func @transform_5(%arg0: i32) -> (i32, i32) {
    %c0_i32 = arith.constant 0 : i32
    %c0_i32_0 = arith.constant 0 : i32
    return %c0_i32, %arg0 : i32, i32
  }
}

</mosaic_0001>

<bundles_post_ra>
// kernel: tpu_custom_call.1
= control target key start
LH: loop header
LB: loop body
LE: loop exit
PB: predicated region body
PF: predicated region fallthrough
CT: control target
= control target key end

     0   :  { %v56_v0 = vlaneseq  ;;  %vm99_vm0 = vcmask 1041408   ;;  %s773_s0 = inlined_call_operand.vmem [shape: f32[32,50], index: 0, kind: input, shape index: {}]   ;;  %s774_s1 = inlined_call_operand.vmem [shape: f32[32,10], index: 1, kind: input, shape index: {}]   ;;  %s775_s2 = inlined_call_operand.vmem [shape: s32[1,128], index: 2, kind: input, shape index: {}]   ;;  %s776_s3 = inlined_call_operand.vmem [shape: s32[1,128], index: 3, kind: input, shape index: {}]   ;;  %s777_s4 = inlined_call_operand.vmem [shape: s32[1,128], index: 4, kind: input, shape index: {}]   ;;  %s778_s5 = inlined_call_operand.hbm [shape: f32[1,128], index: 5, kind: output, shape index: {}]  }
   0x1   :  { %v605_v1 = vld [vmem:[%s775_s2] ss:$0 sm:$0xff]  ;;  %v26_v2 = vld [vmem:[%s774_s1 + $0x8] sm:$0xff] }
   0x2   :  { %v610_v3 = vshrl.u32 %v56_v0, 7  ;;  %v615_v4 = vld [vmem:[%s776_s3] ss:$0 sm:$0xff]  ;;  %v45_v5 = vpack.c.bf16 %v26_v2, %v26_v2 }
   0x3   :  { %v620_v6 = vld [vmem:[%s777_s4] ss:$0 sm:$0xff] }
   0x4   :  { %v63_v7 = vadd.s32 48, %v610_v3  ;;  %v624_v8 = vadd.s32 8, %v610_v3  ;;  %v62_v9 = vadd.s32 40, %v610_v3  ;;  %v49_v10 = vunpack.c.l.bf16 %v45_v5 }
   0x5   :  { %10 = vsyncpa [#allocation3], 0  ;;  %v61_v11 = vadd.s32 32, %v610_v3  ;;  %v569_v12 = vmov 0.0   ;;  %v27_v15 = vld [vmem:[%s774_s1 + $0x10] sm:$0xff]  ;;  %vm174_vm5 = vcmp.eq.s32.totalorder %v610_v3, %v615_v4  ;;  %v21_v17 = vld [vmem:[%s773_s0] sm:$0xff]  ;;  %vm65_vm14 = vcmp.eq.s32.totalorder %v610_v3, %v605_v1 }
   0x6   :  { %vm71_vm1 = vcmp.eq.s32.totalorder %v63_v7, %v605_v1  ;;  %vm175_vm2 = vcmp.eq.s32.totalorder %v624_v8, %v615_v4  ;;  %vm70_vm3 = vcmp.eq.s32.totalorder %v62_v9, %v605_v1  ;;  %vm273_vm4 = vcmp.eq.s32.totalorder %v63_v7, %v620_v6  ;;  %v28_v25 = vld [vmem:[%s774_s1 + $0x18] sm:$0xff]  ;;  %v22_v27 = vld [vmem:[%s773_s0 + $0x8] sm:$0xff]  ;;  %v23_v34 = vld [vmem:[%s773_s0 + $0x10] sm:$0xff]  ;;  %s446_s14 = sshll.u32 %s778_s5, 4  ;;  %s447_s14 = int_to_ptr.hbm [resolvable:$true] %s446_s14 }
   0x7   :  { %v461_v13 = vsel %vm71_vm1, 1.0, %v569_v12  ;;  %v631_v14 = vsel %vm175_vm2, 1.0, %v569_v12  ;;  %v53_v16 = vsub.f32 %v26_v2, %v49_v10  ;;  %vm180_vm6 = vcmask 80896   ;;  %v24_v39 = vld [vmem:[%s773_s0 + $0x18] sm:$0xff]  ;;  %v25_v43 = vld [vmem:[%s774_s1] sm:$0xff]  ;;  %s571_s0 = smov [#allocation2]  }
   0x8   :  { %462 = vmatpush.msk.msra.mxu0 %vm99_vm0, %v461_v13  ;;  %473 = vmatpush.msk.msra.mxu1 %vm99_vm0, %v461_v13  ;;  %v60_v18 = vadd.s32 24, %v610_v3  ;;  %v570_v19 = vmov 1.0   ;;  %v504_v20 = vsel %vm273_vm4, 1.0, %v569_v12  ;;  %v46_v21 = vpack.c.bf16 %v27_v15, %v27_v15  ;;  %s444_s1 = sshll.u32 %s571_s0, 4  ;;  %s445_s1 = int_to_ptr.vmem [resolvable:$true] %s444_s1 }
   0x9   :  { %527 = vmatpush.msk.msra.mxu2 %vm99_vm0, %v631_v14  ;;  %529 = vmatpush.msk.msra.mxu3 %vm99_vm0, %v631_v14  ;;  %vm69_vm7 = vcmp.eq.s32.totalorder %v61_v11, %v605_v1  ;;  %v59_v22 = vadd.s32 16, %v610_v3  ;;  %v32_v23 = vpack.c.bf16 %v21_v17, %v21_v17  ;;  %vm272_vm8 = vcmp.eq.s32.totalorder %v62_v9, %v620_v6 }
   0xa   :  { %463 = vmatpush.msk.msra.mxu0 %vm70_vm3, %v570_v19  ;;  %474 = vmatpush.msk.msra.mxu1 %vm70_vm3, %v570_v19  ;;  %vm68_vm9 = vcmp.eq.s32.totalorder %v60_v18, %v605_v1  ;;  %v50_v24 = vunpack.c.l.bf16 %v46_v21  ;;  %vm271_vm10 = vcmp.eq.s32.totalorder %v61_v11, %v620_v6  ;;  %vm270_vm12 = vcmp.eq.s32.totalorder %v60_v18, %v620_v6 }
   0xb   :  { %528 = vmatpush.msk.msra.mxu2 %vm174_vm5, %v570_v19  ;;  %530 = vmatpush.msk.msra.mxu3 %vm174_vm5, %v570_v19  ;;  %vm67_vm11 = vcmp.eq.s32.totalorder %v59_v22, %v605_v1  ;;  %v36_v26 = vunpack.c.l.bf16 %v32_v23  ;;  %vm66_vm13 = vcmp.eq.s32.totalorder %v624_v8, %v605_v1  ;;  %v47_v29 = vpack.c.bf16 %v28_v25, %v28_v25 }
   0xc   :  { %489 = vmatmul.msk.f32.vlgmr.msra.gmra.mxu2 %vm180_vm6, %v53_v16  ;;  %495 = vmatmul.msk.f32.vlgmr.msra.gmra.mxu3 %vm180_vm6, %v49_v10  ;;  %v54_v28 = vsub.f32 %v27_v15, %v50_v24  ;;  %v33_v31 = vpack.c.bf16 %v22_v27, %v22_v27  ;;  %vm86_vm15 = vcmask 408576   ;;  %vm269_vm1 = vcmp.eq.s32.totalorder %v59_v22, %v620_v6 }
   0xd   :  { %505 = vmatpush.msk.msrb.mxu2 %vm99_vm0, %v504_v20  ;;  %516 = vmatpush.msk.msrb.mxu3 %vm99_vm0, %v504_v20  ;;  %v40_v30 = vsub.f32 %v21_v17, %v36_v26  ;;  %v51_v32 = vunpack.c.l.bf16 %v47_v29  ;;  %vm268_vm2 = vcmp.eq.s32.totalorder %v624_v8, %v620_v6  ;;  %vm267_vm3 = vcmp.eq.s32.totalorder %v610_v3, %v620_v6 }
   0xe   :  { %464 = vmatpush.msk.msra.mxu0 %vm69_vm7, %v570_v19  ;;  %475 = vmatpush.msk.msra.mxu1 %vm69_vm7, %v570_v19  ;;  %v37_v33 = vunpack.c.l.bf16 %v33_v31  ;;  %v34_v37 = vpack.c.bf16 %v23_v34, %v23_v34  ;;  %v35_v41 = vpack.c.bf16 %v24_v39, %v24_v39  ;;  %v44_v45 = vpack.c.bf16 %v25_v43, %v25_v43 }
   0xf   :  { %506 = vmatpush.msk.msrb.mxu2 %vm272_vm8, %v570_v19  ;;  %517 = vmatpush.msk.msrb.mxu3 %vm272_vm8, %v570_v19  ;;  %v55_v35 = vsub.f32 %v28_v25, %v51_v32 }
  0x10   :  { %465 = vmatpush.msk.msra.mxu0 %vm68_vm9, %v570_v19  ;;  %476 = vmatpush.msk.msra.mxu1 %vm68_vm9, %v570_v19  ;;  %v41_v36 = vsub.f32 %v22_v27, %v37_v33  ;;  %v38_v38 = vunpack.c.l.bf16 %v34_v37  ;;  %v39_v42 = vunpack.c.l.bf16 %v35_v41  ;;  %v48_v46 = vunpack.c.l.bf16 %v44_v45 }
  0x11   :  { %507 = vmatpush.msk.msrb.mxu2 %vm271_vm10, %v570_v19  ;;  %518 = vmatpush.msk.msrb.mxu3 %vm271_vm10, %v570_v19 }
  0x12   :  { %466 = vmatpush.msk.msra.mxu0 %vm67_vm11, %v570_v19  ;;  %477 = vmatpush.msk.msra.mxu1 %vm67_vm11, %v570_v19  ;;  %v42_v40 = vsub.f32 %v23_v34, %v38_v38  ;;  %v43_v44 = vsub.f32 %v24_v39, %v39_v42  ;;  %v52_v47 = vsub.f32 %v25_v43, %v48_v46 }
  0x13   :  { %508 = vmatpush.msk.msrb.mxu2 %vm270_vm12, %v570_v19  ;;  %519 = vmatpush.msk.msrb.mxu3 %vm270_vm12, %v570_v19 }
  0x14   :  { %467 = vmatpush.msk.msra.mxu0 %vm66_vm13, %v570_v19  ;;  %478 = vmatpush.msk.msra.mxu1 %vm66_vm13, %v570_v19 }
  0x15   :  { %490 = vmatmul.msk.f32.gmra.mxu2 %vm180_vm6, %v54_v28  ;;  %496 = vmatmul.msk.f32.gmra.mxu3 %vm180_vm6, %v50_v24 }
  0x16   :  { %468 = vmatpush.msk.msra.mxu0 %vm65_vm14, %v570_v19  ;;  %479 = vmatpush.msk.msra.mxu1 %vm65_vm14, %v570_v19 }
  0x17   :  { %469 = vmatmul.msk.f32.vlgmr.msra.gmra.mxu0 %vm86_vm15, %v40_v30  ;;  %480 = vmatmul.msk.f32.vlgmr.msra.gmra.mxu1 %vm86_vm15, %v36_v26 }
  0x18   :  { %509 = vmatpush.msk.msrb.mxu2 %vm269_vm1, %v570_v19  ;;  %520 = vmatpush.msk.msrb.mxu3 %vm269_vm1, %v570_v19 }
  0x19   :  { %486 = vmatpush.msk.msrb.mxu0 %vm99_vm0, %v631_v14  ;;  %492 = vmatpush.msk.msrb.mxu1 %vm99_vm0, %v631_v14 }
  0x1a   :  { %510 = vmatpush.msk.msrb.mxu2 %vm268_vm2, %v570_v19  ;;  %521 = vmatpush.msk.msrb.mxu3 %vm268_vm2, %v570_v19 }
  0x1b   :  { %487 = vmatpush.msk.msrb.mxu0 %vm174_vm5, %v570_v19  ;;  %493 = vmatpush.msk.msrb.mxu1 %vm174_vm5, %v570_v19 }
  0x1c   :  { %511 = vmatpush.msk.msrb.mxu2 %vm267_vm3, %v570_v19  ;;  %522 = vmatpush.msk.msrb.mxu3 %vm267_vm3, %v570_v19 }
  0x1d   :  { %491 = vmatmul.msk.f32.gmra.mxu2 %vm180_vm6, %v55_v35  ;;  %497 = vmatmul.msk.f32.gmra.mxu3 %vm180_vm6, %v51_v32 }
  0x1f   :  { %470 = vmatmul.msk.f32.gmra.mxu0 %vm86_vm15, %v41_v36  ;;  %481 = vmatmul.msk.f32.gmra.mxu1 %vm86_vm15, %v37_v33 }
  0x25   :  { %512 = vmatmul.msk.f32.vlgmr.msrb.gmra.mxu2 %vm86_vm15, %v40_v30  ;;  %523 = vmatmul.msk.f32.vlgmr.msrb.gmra.mxu3 %vm86_vm15, %v36_v26 }
  0x27   :  { %471 = vmatmul.msk.f32.gmra.mxu0 %vm86_vm15, %v42_v40  ;;  %482 = vmatmul.msk.f32.gmra.mxu1 %vm86_vm15, %v38_v38 }
  0x2d   :  { %513 = vmatmul.msk.f32.gmra.mxu2 %vm86_vm15, %v41_v36  ;;  %524 = vmatmul.msk.f32.gmra.mxu3 %vm86_vm15, %v37_v33 }
  0x2f   :  { %472 = vmatmul.msk.f32.gmra.mxu0 %vm86_vm15, %v43_v44  ;;  %483 = vmatmul.msk.f32.gmra.mxu1 %vm86_vm15, %v39_v42 }
  0x35   :  { %514 = vmatmul.msk.f32.gmra.mxu2 %vm86_vm15, %v42_v40  ;;  %525 = vmatmul.msk.f32.gmra.mxu3 %vm86_vm15, %v38_v38 }
  0x37   :  { %488 = vmatmul.msk.f32.vlgmr.msrb.gmra.mxu0 %vm180_vm6, %v52_v47  ;;  %494 = vmatmul.msk.f32.vlgmr.msrb.gmra.mxu1 %vm180_vm6, %v48_v46 }
  0x3d   :  { %515 = vmatmul.msk.f32.gmra.mxu2 %vm86_vm15, %v43_v44  ;;  %526 = vmatmul.msk.f32.gmra.mxu3 %vm86_vm15, %v39_v42 }
  0x8f   :  { %v216_v48 = vpop.f32.mrf.mxu2  ;;  %v257_v49 = vpop.f32.mrf.mxu3 }
  0x90   :  { %v751_v50 = vadd.f32 %v257_v49, %v216_v48 }
  0x94   :  { %v120_v51 = vpop.f32.mrf.mxu0  ;;  %v161_v52 = vpop.f32.mrf.mxu1 }
  0x95   :  { %v757_v61 = vadd.f32 %v161_v52, %v120_v51 }
  0x97   :  { %v349_v1 = vmul.f32 %v757_v61, %v757_v61 }
  0x98   :  { %v219_v53 = vpop.f32.mrf.mxu2  ;;  %v260_v54 = vpop.f32.mrf.mxu3 }
  0x99   :  { %v753_v55 = vadd.f32 %v260_v54, %v219_v53 }
  0x9c   :  { %v123_v56 = vpop.f32.mrf.mxu0  ;;  %v164_v57 = vpop.f32.mrf.mxu1 }
  0x9d   :  { %v759_v62 = vadd.f32 %v164_v57, %v123_v56 }
  0x9f   :  { %v350_v2 = vmul.f32 %v759_v62, %v759_v62 }
  0xa0   :  { %v222_v58 = vpop.f32.mrf.mxu2  ;;  %v263_v59 = vpop.f32.mrf.mxu3 }
  0xa1   :  { %v755_v60 = vadd.f32 %v263_v59, %v222_v58  ;;  %v353_v6 = vadd.f32 %v350_v2, %v349_v1 }
  0xa4   :  { %v126_v63 = vpop.f32.mrf.mxu0  ;;  %v167_v0 = vpop.f32.mrf.mxu1 }
  0xa5   :  { %v168_v3 = vadd.f32 %v167_v0, %v126_v63 }
  0xa7   :  { %v351_v7 = vmul.f32 %v168_v3, %v168_v3 }
  0xa8   :  { %v308_v4 = vpop.f32.mrf.mxu2  ;;  %v337_v5 = vpop.f32.mrf.mxu3 }
  0xa9   :  { %v354_v11 = vadd.f32 %v353_v6, %v351_v7  ;;  %v338_v23 = vadd.f32 %v337_v5, %v308_v4 }
  0xab   :  { %v362_v28 = vmul.f32 %v338_v23, %v338_v23 }
  0xac   :  { %v129_v8 = vpop.f32.mrf.mxu0  ;;  %v170_v9 = vpop.f32.mrf.mxu1 }
  0xad   :  { %v171_v10 = vadd.f32 %v170_v9, %v129_v8 }
  0xaf   :  { %v352_v12 = vmul.f32 %v171_v10, %v171_v10 }
  0xb0   :  { %v311_v13 = vpop.f32.mrf.mxu2  ;;  %v340_v14 = vpop.f32.mrf.mxu3 }
  0xb1   :  { %v355_v15 = vadd.f32 %v354_v11, %v352_v12  ;;  %v341_v22 = vadd.f32 %v340_v14, %v311_v13 }
  0xb3   :  { %v356_v16 = vrot.slane %v355_v15, 4  ;;  %v363_v27 = vmul.f32 %v341_v22, %v341_v22 }
  0xb4   :  { %v213_v57 = vpop.f32.mrf.mxu0  ;;  %v254_v58 = vpop.f32.mrf.mxu1 }
  0xb5   :  { %v357_v17 = vadd.f32 %v356_v16, %v355_v15  ;;  %v366_v33 = vadd.f32 %v363_v27, %v362_v28  ;;  %v255_v0 = vadd.f32 %v254_v58, %v213_v57 }
  0xb7   :  { %v358_v18 = vrot.slane %v357_v17, 2 }
  0xb8   :  { %v314_v19 = vpop.f32.mrf.mxu2  ;;  %v343_v20 = vpop.f32.mrf.mxu3 }
  0xb9   :  { %v359_v21 = vadd.f32 %v358_v18, %v357_v17  ;;  %v344_v25 = vadd.f32 %v343_v20, %v314_v19 }
  0xbb   :  { %v360_v24 = vrot.slane %v359_v21, 1  ;;  %v364_v30 = vmul.f32 %v344_v25, %v344_v25 }
  0xbd   :  { %v361_v26 = vadd.f32 %v360_v24, %v359_v21  ;;  %v367_v35 = vadd.f32 %v366_v33, %v364_v30 }
  0xbf   :  { %v375_v29 = vmax.f32 %v361_v26, 1e-24 }
  0xc0   :  { %v317_v31 = vpop.f32.mrf.mxu2  ;;  %v346_v32 = vpop.f32.mrf.mxu3 }
  0xc1   :  { %537 = vrsqrt.f32 %v375_v29  ;;  %v347_v34 = vadd.f32 %v346_v32, %v317_v31  ;;  %vm382_vm4 = vweird.f32 %v375_v29 }
  0xc3   :  { %v365_v36 = vmul.f32 %v347_v34, %v347_v34 }
  0xc5   :  { %v368_v37 = vadd.f32 %v367_v35, %v365_v36 }
  0xc7   :  { %v538_v38 = vpop.eup %537  ;;  %v369_v39 = vrot.slane %v368_v37, 4 }
  0xc8   :  { %v377_v41 = vmul.f32 %v538_v38, %v375_v29  ;;  %vm383_vm0 = vweird.f32 %v538_v38 }
  0xc9   :  { %v370_v40 = vadd.f32 %v369_v39, %v368_v37  ;;  %vm384_vm5 = vmor %vm382_vm4, %vm383_vm0 }
  0xca   :  { %v378_v44 = vmul.f32 %v538_v38, %v377_v41 }
  0xcb   :  { %v371_v42 = vrot.slane %v370_v40, 2 }
  0xcc   :  { %v379_v47 = vmul.f32 0.5, %v378_v44 }
  0xcd   :  { %v372_v43 = vadd.f32 %v371_v42, %v370_v40 }
  0xce   :  { %v380_v49 = vsub.f32 1.5, %v379_v47 }
  0xcf   :  { %v373_v45 = vrot.slane %v372_v43, 1 }
  0xd0   :  { %v381_v51 = vmul.f32 %v538_v38, %v380_v49 }
  0xd1   :  { %v374_v46 = vadd.f32 %v373_v45, %v372_v43 }
  0xd2   :  { %v385_v54 = vsel %vm384_vm5, %v538_v38, %v381_v51 }
  0xd3   :  { %v390_v48 = vmax.f32 %v374_v46, 1e-24  ;;  %v387_v63 = vmul.f32 %v385_v54, %v759_v62  ;;  %v388_v1 = vmul.f32 %v385_v54, %v168_v3  ;;  %v386_v4 = vmul.f32 %v385_v54, %v757_v61 }
  0xd4   :  { %v389_v6 = vmul.f32 %v385_v54, %v171_v10 }
  0xd5   :  { %539 = vrsqrt.f32 %v390_v48  ;;  %vm397_vm7 = vweird.f32 %v390_v48  ;;  %v407_v7 = vadd.f32 %v388_v1, %v753_v55  ;;  %v405_v9 = vadd.f32 %v386_v4, %v255_v0 }
  0xd6   :  { %v406_v11 = vadd.f32 %v387_v63, %v751_v50  ;;  %v408_v3 = vadd.f32 %v389_v6, %v755_v60 }
  0xdb   :  { %v540_v52 = vpop.eup %539 }
  0xdc   :  { %v392_v53 = vmul.f32 %v540_v52, %v390_v48  ;;  %vm398_vm6 = vweird.f32 %v540_v52 }
  0xdd   :  { %vm399_vm8 = vmor %vm397_vm7, %vm398_vm6 }
  0xde   :  { %v393_v56 = vmul.f32 %v540_v52, %v392_v53 }
  0xe0   :  { %v394_v59 = vmul.f32 0.5, %v393_v56 }
  0xe2   :  { %v395_v2 = vsub.f32 1.5, %v394_v59 }
  0xe4   :  { %v396_v5 = vmul.f32 %v540_v52, %v395_v2 }
  0xe6   :  { %v400_v8 = vsel %vm399_vm8, %v540_v52, %v396_v5 }
  0xe7   :  { %v402_v12 = vmul.f32 %v400_v8, %v341_v22  ;;  %v403_v13 = vmul.f32 %v400_v8, %v344_v25  ;;  %v404_v14 = vmul.f32 %v400_v8, %v347_v34  ;;  %v401_v62 = vmul.f32 %v400_v8, %v338_v23 }
  0xe9   :  { %v409_v15 = vsub.f32 %v405_v9, %v401_v62  ;;  %v410_v16 = vsub.f32 %v406_v11, %v402_v12  ;;  %v411_v17 = vsub.f32 %v407_v7, %v403_v13  ;;  %v412_v61 = vsub.f32 %v408_v3, %v404_v14 }
  0xeb   :  { %v413_v18 = vmul.f32 %v409_v15, %v409_v15  ;;  %v414_v19 = vmul.f32 %v410_v16, %v410_v16  ;;  %v415_v10 = vmul.f32 %v411_v17, %v411_v17  ;;  %v416_v21 = vmul.f32 %v412_v61, %v412_v61 }
  0xed   :  { %v417_v20 = vadd.f32 %v414_v19, %v413_v18 }
  0xef   :  { %v418_v55 = vadd.f32 %v417_v20, %v415_v10 }
  0xf1   :  { %v419_v24 = vadd.f32 %v418_v55, %v416_v21 }
  0xf3   :  { %v420_v26 = vrot.slane %v419_v24, 4 }
  0xf5   :  { %v421_v27 = vadd.f32 %v420_v26, %v419_v24 }
  0xf7   :  { %v422_v50 = vrot.slane %v421_v27, 2 }
  0xf9   :  { %v423_v22 = vadd.f32 %v422_v50, %v421_v27 }
  0xfb   :  { %v424_v25 = vrot.slane %v423_v22, 1 }
  0xfd   :  { %v425_v28 = vadd.f32 %v424_v25, %v423_v22 }
  0xff   :  { %541 = vrsqrt.f32 %v425_v28  ;;  %vm433_vm9 = vcmp.eq.f32.partialorder %v425_v28, inf  ;;  %v436_v34 = vand.u32 2147483648, %v425_v28  ;;  %vm435_vm10 = vcmp.eq.f32.partialorder %v425_v28, 0.0 }
 0x105   :  { %v542_v23 = vpop.eup %541 }
 0x106   :  { %v427_v60 = vmul.f32 %v542_v23, %v425_v28 }
 0x108   :  { %v428_v29 = vmul.f32 %v542_v23, %v427_v60 }
 0x10a   :  { %v429_v30 = vmul.f32 0.5, %v428_v29 }
 0x10c   :  { %v430_v31 = vsub.f32 1.5, %v429_v30 }
 0x10e   :  { %v431_v32 = vmul.f32 %v542_v23, %v430_v31 }
 0x110   :  { %v432_v33 = vmul.f32 %v431_v32, %v425_v28 }
 0x112   :  { %v434_v35 = vsel %vm433_vm9, %v425_v28, %v432_v33 }
 0x113   :  { %v437_v36 = vsel %vm435_vm10, %v436_v34, %v434_v35 }
 0x114   :  { %438 = vst [vmem:[#allocation2] sm:$0x1] %v437_v36 }
 0x115   :  { %449 = dma.vmem_to_hbm [thread:$0]  %s445_s1, 16, %s447_s14, [#allocation3]  }
 0x116   :  { %567 = dma.done.wait [#allocation3], 16  }
 0x117   :  { %568 = vsyncadd [#allocation3], 4294967280 }
 0x118   :  { %454 = vsyncpa [#allocation3], 1 }

</bundles_post_ra>
